<compile_context>
chip_gen: v5e
topology: v5e:2x2
jax: 0.10.0
libtpu: 0.0.40
codegen_flags: <defaults>
</compile_context>

<pallas_src>
import jax
import jax.numpy as jnp
from jax.experimental import pallas as pl
from jax.experimental.pallas import tpu as pltpu


# ----------------------------------------------------------------------------- kernels
def _linear_kernel_inplace(x_ref, w_ref, b_ref, o_ref):
    # x_ref: (tm, tk), w_ref: (tk, tn) = W^T tile, b_ref: (1, tn), o_ref: (tm, tn) f32.
    # The output BlockSpec returns the same block index for every k, so o_ref
    # stays resident in VMEM across the K axis and doubles as the accumulator.
    @pl.when(pl.program_id(2) == 0)
    def _init():
        o_ref[...] = jnp.broadcast_to(b_ref[...], o_ref.shape)

    o_ref[...] += jnp.dot(
        x_ref[...], w_ref[...], preferred_element_type=jnp.float32
    )


def _linear_kernel_scratch(x_ref, w_ref, b_ref, o_ref, acc_ref):
    # Fallback for non-f32 output dtypes: accumulate in an f32 VMEM scratch,
    # cast once in the final-K epilogue.
    k = pl.program_id(2)

    @pl.when(k == 0)
    def _init():
        acc_ref[...] = jnp.broadcast_to(
            b_ref[...].astype(jnp.float32), acc_ref.shape
        )

    acc_ref[...] += jnp.dot(
        x_ref[...], w_ref[...], preferred_element_type=jnp.float32
    )

    @pl.when(k == pl.num_programs(2) - 1)
    def _writeback():
        o_ref[...] = acc_ref[...].astype(o_ref.dtype)


# ----------------------------------------------------------------------------- helpers
def _round_up(x, m):
    return ((x + m - 1) // m) * m


def _cdiv(a, b):
    return (a + b - 1) // b


def _fit_dim(dim, align, tile_max):
    """Pad `dim` only up to `align`; pick a tile (<= tile_max, align-multiple)
    that covers the padded dim with the fewest blocks and minimal extra pad.

    Returns (tile, padded_dim, n_blocks) with padded_dim == n_blocks * tile."""
    dp = _round_up(dim, align)
    n = _cdiv(dp, _round_up(tile_max, align))
    tile = _round_up(_cdiv(dp, n), align)
    return tile, n * tile, n


# ----------------------------------------------------------------------------- wrapper
def logistic_regression_forward(
    x, weight, bias, *,
    tm_max=512, tn_max=512, tk_max=1024,
    compute_dtype=None, weight_buffers=None,
):
    """x: (B, D_in), weight: (D_out, D_in) (PyTorch layout), bias: (D_out,)."""
    B, D_in = x.shape
    D_out = weight.shape[0]
    out_dtype = jnp.dtype(x.dtype)

    tm, Mp, nm = _fit_dim(B, 8, tm_max)
    tn, Np, nn = _fit_dim(D_out, 128, tn_max)
    tk, Kp, nk = _fit_dim(D_in, 128, tk_max)

    # Megacore: ensure >= 2 blocks on a "parallel" axis when the batch is big
    # enough, so both TensorCores (v7x) are used instead of one idling.
    if nm * nn == 1 and _round_up(B, 8) >= 16:
        nm = 2
        tm = _round_up(_cdiv(_round_up(B, 8), nm), 8)
        Mp = nm * tm

    cdt = jnp.dtype(compute_dtype) if compute_dtype is not None else out_dtype

    # One-time layout work on the XLA side: transpose weight to (D_in, D_out),
    # zero-pad to the minimally padded sizes, optional cast.  Zero K-padding
    # contributes nothing to the dot; padded M/N rows/cols are sliced off.
    w_t = weight.T  # (D_in, D_out)
    x_p = jnp.pad(x, ((0, Mp - B), (0, Kp - D_in))) if (Mp != B or Kp != D_in) else x
    w_p = (jnp.pad(w_t, ((0, Kp - D_in), (0, Np - D_out)))
           if (Kp != D_in or Np != D_out) else w_t)
    b_p = jnp.pad(bias, (0, Np - D_out)) if Np != D_out else bias
    b_p = b_p.astype(jnp.float32).reshape(1, Np)
    x_p = x_p.astype(cdt)
    w_p = w_p.astype(cdt)

    grid = (nm, nn, nk)

    w_spec_kwargs = {}
    if weight_buffers is not None:
        # Deeper weight pipeline for the memory-bound GEMV regime (tiny tm).
        w_spec_kwargs["pipeline_mode"] = pl.Buffered(weight_buffers)

    in_specs = [
        pl.BlockSpec((tm, tk), lambda i, j, k: (i, k)),                    # x tile
        pl.BlockSpec((tk, tn), lambda i, j, k: (k, j), **w_spec_kwargs),   # W^T tile
        pl.BlockSpec((1, tn), lambda i, j, k: (0, j)),                     # bias tile
    ]
    out_spec = pl.BlockSpec((tm, tn), lambda i, j, k: (i, j))

    use_scratch = out_dtype != jnp.dtype(jnp.float32)
    kernel = _linear_kernel_scratch if use_scratch else _linear_kernel_inplace
    scratch_shapes = [pltpu.VMEM((tm, tn), jnp.float32)] if use_scratch else []

    esz = cdt.itemsize
    osz = out_dtype.itemsize
    # VMEM budget from actual tile bytes (double-buffered inputs + output +
    # optional scratch) plus headroom, capped well under v7x's 64 MiB per TC.
    tile_bytes = (2 * (tm * tk + tk * tn) * esz
                  + 2 * tn * 4
                  + 2 * tm * tn * osz
                  + (tm * tn * 4 if use_scratch else 0))
    vmem_limit = min(48 * 1024 * 1024, int(tile_bytes) + 16 * 1024 * 1024)

    cost = pl.CostEstimate(
        flops=2 * Mp * Np * Kp,
        transcendentals=0,
        # x is streamed nn times, w is streamed nm times across the grid.
        bytes_accessed=esz * (Mp * Kp * nn + Kp * Np * nm) + 4 * Np + osz * Mp * Np,
    )

    out_p = pl.pallas_call(
        kernel,
        out_shape=jax.ShapeDtypeStruct((Mp, Np), out_dtype),
        grid=grid,
        in_specs=in_specs,
        out_specs=out_spec,
        scratch_shapes=scratch_shapes,
        compiler_params=pltpu.CompilerParams(
            dimension_semantics=("parallel", "parallel", "arbitrary"),
            vmem_limit_bytes=vmem_limit,
        ),
        cost_estimate=cost,
    )(x_p, w_p, b_p)

    return out_p[:B, :D_out]


# ----------------------------------------------------------------------------- demo / checks
if __name__ == "__main__":
    key = jax.random.PRNGKey(0)

    # ---- Small shapes implied by the module: batch=8, input_dim=32, output_dim=16
    B, D_in, D_out = 8, 32, 16
    kx, kw, kb = jax.random.split(key, 3)
    bound = 1.0 / (D_in ** 0.5)  # torch.nn.Linear default init range
    weight = jax.random.uniform(kw, (D_out, D_in), jnp.float32, -bound, bound)
    bias = jax.random.uniform(kb, (D_out,), jnp.float32, -bound, bound)
    x = jax.random.normal(kx, (B, D_in), jnp.float32)

    out = jax.block_until_ready(logistic_regression_forward(x, weight, bias))
    ref = jnp.dot(x, weight.T, precision=jax.lax.Precision.HIGHEST) + bias
    assert out.shape == (B, D_out)
    assert jnp.allclose(out, ref, atol=1e-5, rtol=1e-5)

    # ---- Larger, padded, multi-block sanity check (exercises minimal padding,
    #      megacore M-split, tiling + accumulation).  Tolerance tightened vs.
    #      the previous 1e-2 so precision regressions (e.g. bf16 slips) show up.
    B2, D_in2, D_out2 = 136, 600, 200
    kx2, kw2, kb2 = jax.random.split(jax.random.PRNGKey(1), 3)
    bound2 = 1.0 / (D_in2 ** 0.5)
    weight2 = jax.random.uniform(kw2, (D_out2, D_in2), jnp.float32, -bound2, bound2)
    bias2 = jax.random.uniform(kb2, (D_out2,), jnp.float32, -bound2, bound2)
    x2 = jax.random.normal(kx2, (B2, D_in2), jnp.float32)

    out2 = jax.block_until_ready(logistic_regression_forward(x2, weight2, bias2))
    ref2 = jnp.dot(x2, weight2.T, precision=jax.lax.Precision.HIGHEST) + bias2
    assert out2.shape == (B2, D_out2)
    assert jnp.allclose(out2, ref2, atol=1e-4, rtol=1e-4)

    print("KERNEL_OK")
</pallas_src>

<mosaic_0001>
module attributes {stable_mosaic.version = 11 : i64} {
  func.func @_linear_kernel_inplace(%arg0: i32, %arg1: i32, %arg2: i32, %arg3: memref<8x128xf32, #tpu.memory_space<vmem>>, %arg4: memref<128x128xf32, #tpu.memory_space<vmem>>, %arg5: memref<1x128xf32, #tpu.memory_space<vmem>>, %arg6: memref<8x128xf32, #tpu.memory_space<vmem>>) attributes {dimension_semantics = [#tpu.dimension_semantics<parallel>, #tpu.dimension_semantics<parallel>, #tpu.dimension_semantics<arbitrary>], iteration_bounds = array<i64: 1, 1, 1>, scalar_prefetch = 0 : i64, scratch_operands = 0 : i64, tpu.core_type = #tpu.core_type<tc>, window_params = [{transform_indices = @transform_0, window_bounds = array<i64: 8, 128>}, {transform_indices = @transform_1, window_bounds = array<i64: 128, 128>}, {transform_indices = @transform_2, window_bounds = array<i64: 1, 128>}, {transform_indices = @transform_3, window_bounds = array<i64: 8, 128>}]} {
    %c0_i32 = arith.constant 0 : i32
    %0 = arith.cmpi eq, %arg2, %c0_i32 : i32
    %1 = arith.extui %0 : i1 to i32
    %c0_i32_0 = arith.constant 0 : i32
    %2 = arith.cmpi ne, %1, %c0_i32_0 : i32
    scf.if %2 {
      %c0_8 = arith.constant 0 : index
      %c0_9 = arith.constant 0 : index
      %9 = vector.load %arg5[%c0_8, %c0_9] : memref<1x128xf32, #tpu.memory_space<vmem>>, vector<1x128xf32>
      %10 = vector.shape_cast %9 : vector<1x128xf32> to vector<1x128xf32>
      %11 = vector.broadcast %10 : vector<1x128xf32> to vector<8x128xf32>
      %c0_10 = arith.constant 0 : index
      %c0_11 = arith.constant 0 : index
      %12 = vector.load %arg6[%c0_10, %c0_11] : memref<8x128xf32, #tpu.memory_space<vmem>>, vector<8x128xf32>
      tpu.vector_store %arg6[%c0_10, %c0_11], %11 {strides = array<i32>} : memref<8x128xf32, #tpu.memory_space<vmem>>, vector<8x128xf32>,
    } else {
    }
    %c0 = arith.constant 0 : index
    %c0_1 = arith.constant 0 : index
    %3 = vector.load %arg6[%c0, %c0_1] : memref<8x128xf32, #tpu.memory_space<vmem>>, vector<8x128xf32>
    %c0_2 = arith.constant 0 : index
    %c0_3 = arith.constant 0 : index
    %4 = vector.load %arg3[%c0_2, %c0_3] : memref<8x128xf32, #tpu.memory_space<vmem>>, vector<8x128xf32>
    %c0_4 = arith.constant 0 : index
    %c0_5 = arith.constant 0 : index
    %5 = vector.load %arg4[%c0_4, %c0_5] : memref<128x128xf32, #tpu.memory_space<vmem>>, vector<128x128xf32>
    %cst = arith.constant dense<0.000000e+00> : vector<8x128xf32>
    %6 = tpu.matmul %4, %5, %cst {dimension_numbers = #tpu.dot_dimension_numbers<[1], [0], [0], [1], [0, 0, 1, 1], [], []>} : vector<8x128xf32>, vector<128x128xf32>, vector<8x128xf32> -> vector<8x128xf32>
    %7 = arith.addf %3, %6 : vector<8x128xf32>
    %c0_6 = arith.constant 0 : index
    %c0_7 = arith.constant 0 : index
    %8 = vector.load %arg6[%c0_6, %c0_7] : memref<8x128xf32, #tpu.memory_space<vmem>>, vector<8x128xf32>
    tpu.vector_store %arg6[%c0_6, %c0_7], %7 {strides = array<i32>} : memref<8x128xf32, #tpu.memory_space<vmem>>, vector<8x128xf32>,
    return
  }
  func.func @transform_0(%arg0: i32, %arg1: i32, %arg2: i32) -> (i32, i32) {
    %c0_i32 = arith.constant 0 : i32
    return %arg0, %arg2 : i32, i32
  }
  func.func @transform_1(%arg0: i32, %arg1: i32, %arg2: i32) -> (i32, i32) {
    %c0_i32 = arith.constant 0 : i32
    return %arg2, %arg1 : i32, i32
  }
  func.func @transform_2(%arg0: i32, %arg1: i32, %arg2: i32) -> (i32, i32) {
    %c0_i32 = arith.constant 0 : i32
    %c0_i32_0 = arith.constant 0 : i32
    return %c0_i32, %arg1 : i32, i32
  }
  func.func @transform_3(%arg0: i32, %arg1: i32, %arg2: i32) -> (i32, i32) {
    %c0_i32 = arith.constant 0 : i32
    return %arg0, %arg1 : i32, i32
  }
}

</mosaic_0001>

<bundles_post_ra>
// kernel: tpu_custom_call.1
= control target key start
LH: loop header
LB: loop body
LE: loop exit
PB: predicated region body
PF: predicated region fallthrough
CT: control target
= control target key end

     0   :  { %8 = vsyncpa [#allocation3], 0  ;;  %s233_s0 = inlined_call_operand.hbm [shape: f32[8,128], index: 0, kind: input, shape index: {}]   ;;  %s234_s1 = inlined_call_operand.hbm [shape: f32[128,128], index: 1, kind: input, shape index: {}]   ;;  %s235_s2 = inlined_call_operand.vmem [shape: f32[1,128], index: 2, kind: input, shape index: {}]   ;;  %s236_s3 = inlined_call_operand.hbm [shape: f32[8,128], index: 3, kind: output, shape index: {}]  }
   0x1   :  { %9 = vsyncpa [#allocation6], 0 }
   0x2   :  { %10 = vsyncpa [#allocation4], 0  ;;  %s16_s14 = sshll.u32 %s233_s0, 4  ;;  %s196_s15 = smov [#allocation2]   ;;  %s17_s14 = int_to_ptr.hbm [resolvable:$true] %s16_s14 }
   0x3   :  { %s18_s16 = sshll.u32 %s196_s15, 4  ;;  %s26_s19 = sshll.u32 %s234_s1, 4  ;;  %s19_s16 = int_to_ptr.vmem [resolvable:$true] %s18_s16  ;;  %s27_s19 = int_to_ptr.hbm [resolvable:$true] %s26_s19 }
   0x4   :  { %21 = dma.hbm_to_vmem [thread:$0]  %s17_s14, 128, %s19_s16, [#allocation3]  }
   0x5   :  { %s197_s20 = smov [#allocation5]   ;;  %s198_s22 = smov 128  }
   0x6   :  { %s28_s21 = sshll.u32 %s197_s20, 4  ;;  %s199_s23 = smov 8   ;;  %s29_s21 = int_to_ptr.vmem [resolvable:$true] %s28_s21 }
   0x7   :  { %34 = dma.hbm_to_vmem [thread:$0]  %s27_s19, 2048, %s29_s21, [#allocation6], %s198_s22, %s198_s22, %s199_s23  }
   0x8   :  { %190 = dma.done.wait [#allocation3], 128  }
   0x9   :  { %191 = vsyncadd [#allocation3], 4294967168 }
   0xa   :  { %192 = dma.done.wait [#allocation6], 2048  }
   0xb   :  { %193 = vsyncadd [#allocation6], 4294965248  ;;  %v71_v0 = vld [vmem:[#allocation5 + $0x78] sm:$0xff]  ;;  %v70_v1 = vld [vmem:[#allocation5 + $0x70] sm:$0xff]  ;;  %s200_s24 = smov [#allocation7]   ;;  %s101_s28 = sshll.u32 %s236_s3, 4  ;;  %s102_s28 = int_to_ptr.hbm [resolvable:$true] %s101_s28 }
   0xc   :  { %72 = vmatpush.msra.mxu0 %v71_v0  ;;  %v69_v2 = vld [vmem:[#allocation5 + $0x68] sm:$0xff]  ;;  %v68_v3 = vld [vmem:[#allocation5 + $0x60] sm:$0xff]  ;;  %v67_v4 = vld [vmem:[#allocation5 + $0x58] sm:$0xff]  ;;  %s99_s25 = sshll.u32 %s200_s24, 4  ;;  %s100_s25 = int_to_ptr.vmem [resolvable:$true] %s99_s25 }
   0xd   :  { %v66_v5 = vld [vmem:[#allocation5 + $0x50] sm:$0xff]  ;;  %v65_v6 = vld [vmem:[#allocation5 + $0x48] sm:$0xff]  ;;  %v64_v7 = vld [vmem:[#allocation5 + $0x40] sm:$0xff] }
   0xe   :  { %73 = vmatpush.msra.mxu0 %v70_v1  ;;  %v63_v8 = vld [vmem:[#allocation5 + $0x38] sm:$0xff]  ;;  %v62_v9 = vld [vmem:[#allocation5 + $0x30] sm:$0xff]  ;;  %v61_v10 = vld [vmem:[#allocation5 + $0x28] sm:$0xff] }
   0xf   :  { %v60_v11 = vld [vmem:[#allocation5 + $0x20] sm:$0xff]  ;;  %v59_v12 = vld [vmem:[#allocation5 + $0x18] sm:$0xff]  ;;  %v58_v13 = vld [vmem:[#allocation5 + $0x10] sm:$0xff] }
  0x10   :  { %74 = vmatpush.msra.mxu0 %v69_v2  ;;  %v57_v14 = vld [vmem:[#allocation5 + $0x8] sm:$0xff]  ;;  %v56_v15 = vld [vmem:[#allocation5] sm:$0xff]  ;;  %v55_v16 = vld [vmem:[#allocation2] sm:$0xff] }
  0x11   :  { %v117_v17 = vld [vmem:[%s235_s2] ss:$0 sm:$0xff] }
  0x12   :  { %75 = vmatpush.msra.mxu0 %v68_v3 }
  0x14   :  { %76 = vmatpush.msra.mxu0 %v67_v4 }
  0x16   :  { %77 = vmatpush.msra.mxu0 %v66_v5 }
  0x18   :  { %78 = vmatpush.msra.mxu0 %v65_v6 }
  0x1a   :  { %79 = vmatpush.msra.mxu0 %v64_v7 }
  0x1c   :  { %80 = vmatpush.msra.mxu0 %v63_v8 }
  0x1e   :  { %81 = vmatpush.msra.mxu0 %v62_v9 }
  0x20   :  { %82 = vmatpush.msra.mxu0 %v61_v10 }
  0x22   :  { %83 = vmatpush.msra.mxu0 %v60_v11 }
  0x24   :  { %84 = vmatpush.msra.mxu0 %v59_v12 }
  0x26   :  { %85 = vmatpush.msra.mxu0 %v58_v13 }
  0x28   :  { %86 = vmatpush.msra.mxu0 %v57_v14 }
  0x2a   :  { %87 = vmatpush.msra.mxu0 %v56_v15 }
  0x2b   :  { %88 = vmatmul.f32.vlgmr.msra.gmra.mxu0 %v55_v16 }
  0xa8   :  { %v89_v18 = vpop.f32.mrf.mxu0 }
  0xa9   :  { %v92_v19 = vadd.f32 %v117_v17, %v89_v18 }
  0xab   :  { %93 = vst [vmem:[#allocation7] sm:$0xff] %v92_v19 }
  0xac   :  { %104 = dma.vmem_to_hbm [thread:$0]  %s100_s25, 128, %s102_s28, [#allocation4]  }
  0xad   :  { %194 = dma.done.wait [#allocation4], 128  }
  0xae   :  { %195 = vsyncadd [#allocation4], 4294967168 }
  0xaf   :  { %109 = vsyncpa [#allocation3], 1 }
  0xb0   :  { %110 = vsyncpa [#allocation6], 1 }
  0xb1   :  { %111 = vsyncpa [#allocation4], 1 }

</bundles_post_ra>
